<compile_context>
chip_gen: v5e
topology: v5e:2x2
jax: 0.10.0
libtpu: 0.0.40
codegen_flags: <defaults>
</compile_context>

<pallas_src>
from functools import partial

import jax
import jax.numpy as jnp
from jax.experimental import pallas as pl
from jax.experimental.pallas import tpu as pltpu


def _expand_kernel(pwt_ref, x_ref, o_ref, *, gain, w, h, c_tile, precision):
    """One grid step = one (batch, channel-tile) pair.

    pwt_ref: (s, w, W)                resident 0/1 column-interleave matrices
    x_ref  : (1, s*s, c_tile, h, w)   the s**2 source channel groups of this tile
    o_ref  : (1, c_tile, h, s*W)      output with H split as (h, s) and (s, W) merged
    """
    s = gain
    W = s * w
    out_dt = o_ref.dtype

    groups = []
    for i1 in range(s):                       # static unroll (s is tiny)
        acc = None
        for i2 in range(s):
            # Fold the whole channel tile into the matmul M dimension:
            # (c_tile, h, w) -> (c_tile*h, w); a layout no-op when h % 8 == 0.
            lhs = x_ref[0, i1 * s + i2].reshape(c_tile * h, w)
            m = pwt_ref[i2]                   # (w, W) slab, no misaligned slice
            part = jnp.dot(lhs, m,
                           preferred_element_type=out_dt,
                           precision=precision)            # (c_tile*h, W)
            acc = part if acc is None else acc + part      # disjoint supports
        groups.append(acc)                    # rows of output row-group i1
    # Lane-dense output: assemble the full (c_tile*h, s*W) slab and issue a
    # single full-width store (avoids s masked sub-width stores per step).
    full = jnp.concatenate(groups, axis=-1)   # column j = i1*W + w_out
    o_ref[0] = full.reshape(c_tile, h, s * W).astype(out_dt)


def _pick_c_tile(c_out, per_channel_bytes, target_block_bytes):
    """Largest divisor of c_out whose block stays under the byte target."""
    cap = max(1, target_block_bytes // max(1, per_channel_bytes))
    best = 1
    for d in range(1, c_out + 1):
        if c_out % d == 0 and d <= cap:
            best = d
    return best


def expand(x, gain=2, *, block_channels=None):
    b, c, h, w = x.shape
    s = int(gain)
    assert c % (s * s) == 0, "channels must be divisible by gain**2"
    c_out = c // (s * s)
    W = s * w                      # output width
    H = s * h                      # output height

    # dtype / MXU-precision policy (the op is pure data movement -> must be
    # value-preserving).  bf16 x {0,1} is exact at default precision; f32 needs
    # HIGHEST to avoid bf16 truncation of the data operand.
    if x.dtype == jnp.float32:
        precision = jax.lax.Precision.HIGHEST
    elif x.dtype == jnp.bfloat16:
        precision = None
    else:
        # TODO(synk): integer / fp16 / fp8 inputs need a non-MXU copy/select
        # interleave path; routing them through f32 matmuls is not bit-safe.
        raise NotImplementedError(f"expand: unsupported dtype {x.dtype}")

    itemsize = jnp.dtype(x.dtype).itemsize
    per_channel_bytes = s * s * h * w * itemsize    # in block == out block size

    if block_channels is None:
        # ~2 MiB per block => double-buffered in+out ~8 MiB: fits v5e's 16 MiB
        # default scoped VMEM and leaves headroom on v7x's 64 MiB (2 TCs).
        c_tile = _pick_c_tile(c_out, per_channel_bytes, target_block_bytes=2 << 20)
    else:
        c_tile = int(block_channels)
        assert c_out % c_tile == 0, "block_channels must divide c // gain**2"
    n_ct = c_out // c_tile

    # 0/1 column-interleave matrices, built once and kept VMEM-resident
    # (constant index_map => fetched once).  pwt[i2, wi, wo] = 1 iff wo == wi*s + i2.
    wo = jnp.arange(W)[None, None, :]
    wi = jnp.arange(w)[None, :, None]
    i2 = jnp.arange(s)[:, None, None]
    pwt = (wo == wi * s + i2).astype(x.dtype)            # (s, w, W)

    # Free contiguous reshape: (b, c, h, w) -> (b, s*s, c_out, h, w).
    x5 = x.reshape(b, s * s, c_out, h, w)

    cost = pl.CostEstimate(
        flops=2 * b * c_out * s * s * h * w * W,
        transcendentals=0,
        bytes_accessed=2 * b * c * h * w * itemsize + pwt.size * itemsize,
    )

    kernel = partial(_expand_kernel, gain=s, w=w, h=h, c_tile=c_tile,
                     precision=precision)
    out_flat = pl.pallas_call(
        kernel,
        out_shape=jax.ShapeDtypeStruct((b, c_out, h, s * W), x.dtype),
        grid_spec=pltpu.PrefetchScalarGridSpec(
            num_scalar_prefetch=0,
            grid=(b, n_ct),
            in_specs=[
                # Resident constant interleave matrices (same block every step).
                pl.BlockSpec((s, w, W), lambda bi, ci: (0, 0, 0)),
                # c_tile output channels' worth of source data per step.
                pl.BlockSpec((1, s * s, c_tile, h, w),
                             lambda bi, ci: (bi, 0, ci, 0, 0)),
            ],
            out_specs=pl.BlockSpec((1, c_tile, h, s * W),
                                   lambda bi, ci: (bi, ci, 0, 0)),
        ),
        compiler_params=pltpu.CompilerParams(
            dimension_semantics=("parallel", "parallel")),
        cost_estimate=cost,
    )(pwt, x5)

    # (b, c_out, h, s*(s*w)) -> (b, c_out, H, W): free contiguous reshape.
    return out_flat.reshape(b, c_out, H, W)


def expand_ref(x, gain=2):
    # Pure-JAX reference mirroring the PyTorch forward exactly.
    b, c, h, w = x.shape
    s = gain
    y = x.reshape(b, s, s, c // s ** 2, h, w)
    y = jnp.transpose(y, (0, 3, 4, 1, 5, 2))
    return y.reshape(b, c // s ** 2, h * s, w * s)


if __name__ == "__main__":
    key = jax.random.PRNGKey(0)
    key, key2 = jax.random.split(key)

    # Base shape implied by the module: (2, 4, 16, 16), gain=2 -> (2, 1, 32, 32).
    x = jax.random.normal(key, (2, 4, 16, 16), dtype=jnp.float32)
    out = jax.block_until_ready(expand(x, gain=2))
    ref = expand_ref(x, gain=2)
    assert out.shape == (2, 1, 32, 32), out.shape
    assert jnp.allclose(out, ref, atol=1e-6, rtol=1e-6), "f32 mismatch vs reference"

    # bf16 path (native-dtype accumulate, default MXU precision) must be bit-exact.
    xb = x.astype(jnp.bfloat16)
    outb = jax.block_until_ready(expand(xb, gain=2))
    assert outb.dtype == jnp.bfloat16
    assert jnp.array_equal(outb, expand_ref(xb, gain=2)), "bf16 mismatch vs reference"

    # Multi-channel case exercising the channel-blocked grid (c_tile > 1, n_ct > 1).
    x2 = jax.random.normal(key2, (2, 32, 16, 16), dtype=jnp.float32)
    out2 = jax.block_until_ready(expand(x2, gain=2, block_channels=2))   # grid (2, 4)
    assert out2.shape == (2, 8, 32, 32), out2.shape
    assert jnp.allclose(out2, expand_ref(x2, gain=2), atol=1e-6, rtol=1e-6), \
        "channel-blocked f32 mismatch vs reference"

    print("KERNEL_OK")
</pallas_src>

<mosaic_0001>
module attributes {stable_mosaic.version = 11 : i64} {
  func.func @_expand_kernel(%arg0: i32, %arg1: i32, %arg2: memref<2x16x32xf32, #tpu.memory_space<vmem>>, %arg3: memref<1x4x1x16x16xf32, #tpu.memory_space<vmem>>, %arg4: memref<1x1x16x64xf32, #tpu.memory_space<vmem>>) attributes {dimension_semantics = [#tpu.dimension_semantics<parallel>, #tpu.dimension_semantics<parallel>], iteration_bounds = array<i64: 2, 1>, scalar_prefetch = 0 : i64, scratch_operands = 0 : i64, tpu.core_type = #tpu.core_type<tc>, window_params = [{pipeline_mode = #tpu.pipeline_mode<synchronous>, transform_indices = @transform_0, window_bounds = array<i64: 2, 16, 32>}, {transform_indices = @transform_1, window_bounds = array<i64: 1, 4, 1, 16, 16>}, {transform_indices = @transform_2, window_bounds = array<i64: 1, 1, 16, 64>}]} {
    %c0 = arith.constant 0 : index
    %c0_0 = arith.constant 0 : index
    %c0_1 = arith.constant 0 : index
    %c0_2 = arith.constant 0 : index
    %c0_3 = arith.constant 0 : index
    %0 = vector.load %arg3[%c0, %c0_0, %c0_1, %c0_2, %c0_3] : memref<1x4x1x16x16xf32, #tpu.memory_space<vmem>>, vector<1x1x1x16x16xf32>
    %1 = vector.shape_cast %0 : vector<1x1x1x16x16xf32> to vector<1x16x16xf32>
    %2 = vector.shape_cast %1 : vector<1x16x16xf32> to vector<16x16xf32>
    %c0_4 = arith.constant 0 : index
    %c0_5 = arith.constant 0 : index
    %c0_6 = arith.constant 0 : index
    %3 = vector.load %arg2[%c0_4, %c0_5, %c0_6] : memref<2x16x32xf32, #tpu.memory_space<vmem>>, vector<1x16x32xf32>
    %4 = vector.shape_cast %3 : vector<1x16x32xf32> to vector<16x32xf32>
    %cst = arith.constant dense<0.000000e+00> : vector<16x32xf32>
    %5 = tpu.matmul %2, %4, %cst {dimension_numbers = #tpu.dot_dimension_numbers<[1], [0], [0], [1], [0, 0, 1, 1], [], []>, precision = #tpu.contract_precision<fp32>} : vector<16x16xf32>, vector<16x32xf32>, vector<16x32xf32> -> vector<16x32xf32>
    %c0_7 = arith.constant 0 : index
    %c1 = arith.constant 1 : index
    %c0_8 = arith.constant 0 : index
    %c0_9 = arith.constant 0 : index
    %c0_10 = arith.constant 0 : index
    %6 = vector.load %arg3[%c0_7, %c1, %c0_8, %c0_9, %c0_10] : memref<1x4x1x16x16xf32, #tpu.memory_space<vmem>>, vector<1x1x1x16x16xf32>
    %7 = vector.shape_cast %6 : vector<1x1x1x16x16xf32> to vector<1x16x16xf32>
    %8 = vector.shape_cast %7 : vector<1x16x16xf32> to vector<16x16xf32>
    %c1_11 = arith.constant 1 : index
    %c0_12 = arith.constant 0 : index
    %c0_13 = arith.constant 0 : index
    %9 = vector.load %arg2[%c1_11, %c0_12, %c0_13] : memref<2x16x32xf32, #tpu.memory_space<vmem>>, vector<1x16x32xf32>
    %10 = vector.shape_cast %9 : vector<1x16x32xf32> to vector<16x32xf32>
    %cst_14 = arith.constant dense<0.000000e+00> : vector<16x32xf32>
    %11 = tpu.matmul %8, %10, %cst_14 {dimension_numbers = #tpu.dot_dimension_numbers<[1], [0], [0], [1], [0, 0, 1, 1], [], []>, precision = #tpu.contract_precision<fp32>} : vector<16x16xf32>, vector<16x32xf32>, vector<16x32xf32> -> vector<16x32xf32>
    %12 = arith.addf %5, %11 : vector<16x32xf32>
    %c0_15 = arith.constant 0 : index
    %c2 = arith.constant 2 : index
    %c0_16 = arith.constant 0 : index
    %c0_17 = arith.constant 0 : index
    %c0_18 = arith.constant 0 : index
    %13 = vector.load %arg3[%c0_15, %c2, %c0_16, %c0_17, %c0_18] : memref<1x4x1x16x16xf32, #tpu.memory_space<vmem>>, vector<1x1x1x16x16xf32>
    %14 = vector.shape_cast %13 : vector<1x1x1x16x16xf32> to vector<1x16x16xf32>
    %15 = vector.shape_cast %14 : vector<1x16x16xf32> to vector<16x16xf32>
    %c0_19 = arith.constant 0 : index
    %c0_20 = arith.constant 0 : index
    %c0_21 = arith.constant 0 : index
    %16 = vector.load %arg2[%c0_19, %c0_20, %c0_21] : memref<2x16x32xf32, #tpu.memory_space<vmem>>, vector<1x16x32xf32>
    %17 = vector.shape_cast %16 : vector<1x16x32xf32> to vector<16x32xf32>
    %cst_22 = arith.constant dense<0.000000e+00> : vector<16x32xf32>
    %18 = tpu.matmul %15, %17, %cst_22 {dimension_numbers = #tpu.dot_dimension_numbers<[1], [0], [0], [1], [0, 0, 1, 1], [], []>, precision = #tpu.contract_precision<fp32>} : vector<16x16xf32>, vector<16x32xf32>, vector<16x32xf32> -> vector<16x32xf32>
    %c0_23 = arith.constant 0 : index
    %c3 = arith.constant 3 : index
    %c0_24 = arith.constant 0 : index
    %c0_25 = arith.constant 0 : index
    %c0_26 = arith.constant 0 : index
    %19 = vector.load %arg3[%c0_23, %c3, %c0_24, %c0_25, %c0_26] : memref<1x4x1x16x16xf32, #tpu.memory_space<vmem>>, vector<1x1x1x16x16xf32>
    %20 = vector.shape_cast %19 : vector<1x1x1x16x16xf32> to vector<1x16x16xf32>
    %21 = vector.shape_cast %20 : vector<1x16x16xf32> to vector<16x16xf32>
    %c1_27 = arith.constant 1 : index
    %c0_28 = arith.constant 0 : index
    %c0_29 = arith.constant 0 : index
    %22 = vector.load %arg2[%c1_27, %c0_28, %c0_29] : memref<2x16x32xf32, #tpu.memory_space<vmem>>, vector<1x16x32xf32>
    %23 = vector.shape_cast %22 : vector<1x16x32xf32> to vector<16x32xf32>
    %cst_30 = arith.constant dense<0.000000e+00> : vector<16x32xf32>
    %24 = tpu.matmul %21, %23, %cst_30 {dimension_numbers = #tpu.dot_dimension_numbers<[1], [0], [0], [1], [0, 0, 1, 1], [], []>, precision = #tpu.contract_precision<fp32>} : vector<16x16xf32>, vector<16x32xf32>, vector<16x32xf32> -> vector<16x32xf32>
    %25 = arith.addf %18, %24 : vector<16x32xf32>
    %26 = tpu.concatenate %12, %25 in 1 : vector<16x32xf32>, vector<16x32xf32> -> vector<16x64xf32>
    %27 = vector.shape_cast %26 : vector<16x64xf32> to vector<1x16x64xf32>
    %c0_31 = arith.constant 0 : index
    %c0_32 = arith.constant 0 : index
    %c0_33 = arith.constant 0 : index
    %c0_34 = arith.constant 0 : index
    %28 = vector.load %arg4[%c0_31, %c0_32, %c0_33, %c0_34] : memref<1x1x16x64xf32, #tpu.memory_space<vmem>>, vector<1x1x16x64xf32>
    %29 = vector.shape_cast %28 : vector<1x1x16x64xf32> to vector<1x16x64xf32>
    %30 = vector.shape_cast %27 : vector<1x16x64xf32> to vector<1x1x16x64xf32>
    tpu.vector_store %arg4[%c0_31, %c0_32, %c0_33, %c0_34], %30 {strides = array<i32>} : memref<1x1x16x64xf32, #tpu.memory_space<vmem>>, vector<1x1x16x64xf32>,
    return
  }
  func.func @transform_0(%arg0: i32, %arg1: i32) -> (i32, i32, i32) {
    %c0_i32 = arith.constant 0 : i32
    %c0_i32_0 = arith.constant 0 : i32
    %c0_i32_1 = arith.constant 0 : i32
    %c0_i32_2 = arith.constant 0 : i32
    return %c0_i32, %c0_i32_0, %c0_i32_1 : i32, i32, i32
  }
  func.func @transform_1(%arg0: i32, %arg1: i32) -> (i32, i32, i32, i32, i32) {
    %c0_i32 = arith.constant 0 : i32
    %c0_i32_0 = arith.constant 0 : i32
    %c0_i32_1 = arith.constant 0 : i32
    %c0_i32_2 = arith.constant 0 : i32
    return %arg0, %c0_i32, %arg1, %c0_i32_0, %c0_i32_1 : i32, i32, i32, i32, i32
  }
  func.func @transform_2(%arg0: i32, %arg1: i32) -> (i32, i32, i32, i32) {
    %c0_i32 = arith.constant 0 : i32
    %c0_i32_0 = arith.constant 0 : i32
    %c0_i32_1 = arith.constant 0 : i32
    return %arg0, %arg1, %c0_i32, %c0_i32_0 : i32, i32, i32, i32
  }
}

</mosaic_0001>

<bundles_post_ra>
// kernel: tpu_custom_call.1
= control target key start
LH: loop header
LB: loop body
LE: loop exit
PB: predicated region body
PF: predicated region fallthrough
CT: control target
= control target key end

     0   :  { %7 = vsyncpa [#allocation3], 0  ;;  %s1686_s0 = inlined_call_operand.hbm [shape: f32[2,16,32], index: 0, kind: input, shape index: {}]   ;;  %s1687_s1 = inlined_call_operand.hbm [shape: f32[2,4,1,16,16], index: 1, kind: input, shape index: {}]   ;;  %s1688_s2 = inlined_call_operand.hbm [shape: f32[2,1,16,64], index: 2, kind: output, shape index: {}]  }
   0x1   :  { %8 = vsyncpa [#allocation6], 0 }
   0x2   :  { %10 = vsyncpa [#allocation6 + $0x1], 0 }
   0x3   :  { %11 = vsyncpa [#allocation4], 0 }
   0x4   :  { %13 = vsyncpa [#allocation4 + $0x1], 0  ;;  %s1403_s9 = smov 0   ;;  %s1405_s10 = smov 0  }
   0x5   :  { %s1407_s11 = smov 0   ;;  %s1409_s12 = smov 0  }
   0x6   :  { %s1411_s13 = smov 0   ;;  %s1413_s14 = smov 0  }
   0x7 LB: > { %s1131_s15 = sadd.s32 4294967295, %s1380_s14   ;;  %s1132_s16 = sadd.s32 4294967294, %s1380_s14   ;;  %s1380_s14 = sphi %s1413_s14, %s19_s14   ;;  %s1376_s13 = sphi %s1411_s13, %s1700_s13   ;;  %s1372_s12 = sphi %s1409_s12, %s1699_s12   ;;  %s1368_s11 = sphi %s1407_s11, %s1698_s11   ;;  %s1364_s10 = sphi %s1405_s10, %s1697_s10   ;;  %s1360_s9 = sphi %s1403_s9, %s1696_s9  }
   0x8   : > { %p74_p0 = scmp.ne.s32.totalorder %s1364_s10, %s1360_s9  ;;  %p1437_p1 = scmp.eq.s32.totalorder %s1131_s15, 0 }
   0x9   : > { %p1441_p2 = scmp.eq.s32.totalorder %s1131_s15, 1  ;;  %p106_p3 = scmp.eq.s32.totalorder %s1132_s16, 1 }
   0xa   : > { %p1447_p4 = por %p1437_p1, %p74_p0  ;;  %p1133_p5 = scmp.ge.s32.totalorder %s1380_s14, 1 }
   0xb   : > { %p1452_p6 = por %p106_p3, %p74_p0  ;;  %p113_p7 = scmp.lt.s32.totalorder %s1380_s14, 3 }
   0xc   : > { %s124_s23 = sshll.u32 %s1686_s0, 4  ;;  %s1382_s25 = smov [#allocation2]   ;;  %s125_s23 = int_to_ptr.hbm [resolvable:$true] %s124_s23 }
   0xd   : > { %p1460_p8 = pnand %p1133_p5, %p113_p7  ;;  %s126_s26 = sshll.u32 %s1382_s25, 4  ;;  %s127_s26 = int_to_ptr.vmem [resolvable:$true] %s126_s26 }
   0xe   : > { %p1135_p11 = scmp.ge.s32.totalorder %s1380_s14, 2  ;;  %s1383_s27 = smov 128  }
   0xf   : > { %p1164_p9 = pneg %p1460_p8  ;;  %s1384_s28 = smov 8  }
  0x10   : > { %s31_s29 = sadd.s32 1, %s1376_s13  ;;  %s61_s30 = sadd.s32 1, %s1368_s11 }
  0x11   : > { %p1165_p10 = pnand %p1164_p9, %p1437_p1  ;;  %p33_p12 = scmp.ge.s32.totalorder %s31_s29, 2 }
  0x12   : > { %p68_p13 = scmp.ne.s32.totalorder %s1368_s11, %s1364_s10  ;;  %p69_p0 = scmp.eq.s32.totalorder %s1380_s14, 0 }
  0x13   : > { %1167 = dma.hbm_to_vmem [thread:$0]  (!%p1165_p10), %s125_s23, 512, %s127_s26, [#allocation3], %s1383_s27, %s1383_s27, %s1384_s28  }
  0x14   : > { %s1702_s29 = smov (%p33_p12, %s31_s29), 0  ;;  %p1479_p3 = por %p69_p0, %p68_p13 }
  0x15   : > { %p1485_p5 = por %p1441_p2, %p68_p13  ;;  %s56_s5 = ssub.s32 %s1376_s13, %s1702_s29 }
  0x16   : > { %p1177_p7 = scmp.lt.s32.totalorder %s1380_s14, 2  ;;  %p59_p9 = scmp.eq.s32.totalorder %s56_s5, 0 }
  0x17   : > { %s140_s6 = sand.u32 1, %s1368_s11   ;;  %s1154_s15 = sshll.u32 %s1376_s13, 6 }
  0x18   : > { %s1136_s7 = sshll.u32 %s140_s6, 6  ;;  %s151_s22 = scalar_lea.hbm %s1687_s1, %s1154_s15 }
  0x19   : > { %s1494_s8 = scalar_select %p59_p9, %s1368_s11, %s61_s30  }
  0x1a   : > { %s144_s23 = scalar_lea.vmem [#allocation5], %s1136_s7  ;;  %s152_s18 = sshll.u32 %s151_s22, 4  ;;  %s153_s18 = int_to_ptr.hbm [resolvable:$true] %s152_s18 }
  0x1b   : > { %s154_s25 = sshll.u32 %s144_s23, 4  ;;  %p1169_p2 = pnand %p1177_p7, %p1479_p3  ;;  %s155_s25 = int_to_ptr.vmem [resolvable:$true] %s154_s25 }
  0x1c   : > { %s141_s26 = scalar_lea.sflag [#allocation6], %s140_s6  ;;  %166 = sbr.rel (%p1460_p8) target bundleno = 393 (0x189), region = 28 }
  0x1d   : > { %1171 = dma.hbm_to_vmem [thread:$0]  (!%p1169_p2), %s153_s18, 1024, %s155_s25, %s141_s26, %s1383_s27, %s1383_s27, %s1384_s28  }
  0x21   : > { %1347 = dma.done.wait (%p1437_p1), [#allocation3], 512  }
  0x22   : > { %1349 = vsyncadd (%p1437_p1), [#allocation3], 4294966784  ;;  %s1512_s30 = sand.u32 1, %s1364_s10  }
  0x23   : > { %s1141_s3 = sshll.u32 %s1512_s30, 6  ;;  %s174_s5 = scalar_lea.sflag [#allocation6], %s1512_s30 }
  0x24   : > { %s1516_s6 = scalar_lea.vmem [#allocation5], %s1141_s3 }
  0x25   : > { %1351 = dma.done.wait (%p1447_p4), %s174_s5, 1024  }
  0x26   : > { %1353 = vsyncadd (%p1447_p4), %s174_s5, 4294966272  ;;  %vm209_vm0 = vcmask 130048   ;;  %v208_v0 = vld [vmem:[#allocation2 + $0x18] sm:$0xff]  ;;  %v207_v1 = vld [vmem:[#allocation2 + $0x10] sm:$0xff]  ;;  %s1385_s17 = smov 32   ;;  %s1142_s19 = sshll.u32 %s1512_s30, 4 }
  0x27   : > { %v1143_v2 = vld [vmem:[%s1516_s6 + $0x10] sm:$0xff]  ;;  %v1523_v3 = vand.u32 4294901760, %v208_v0  ;;  %v1525_v4 = vand.u32 4294901760, %v207_v1  ;;  %v202_v6 = vld [vmem:[#allocation2 + $0x8] sm:$0xff]  ;;  %v1144_v7 = vld [vmem:[%s1516_s6 + $0x18] sm:$0xff]  ;;  %vm1008_vm1 = vcmask 261120  }
  0x28   : > { %v211_v5 = vsel %vm209_vm0, %v1143_v2, 0  ;;  %v201_v8 = vld [vmem:[#allocation2] sm:$0xff]  ;;  %v1531_v10 = vand.u32 4294901760, %v202_v6  ;;  %v214_v11 = vsel %vm209_vm0, %v1144_v7, 0  ;;  %v200_v28 = vld [vmem:[%s1516_s6 + $0x8] sm:$0xff]  ;;  %v1147_v52 = vld [vmem:[%s1516_s6 + $0x30] sm:$0xff] }
  0x29   : > { %v1529_v9 = vand.u32 4294901760, %v211_v5  ;;  %v1534_v12 = vand.u32 4294901760, %v201_v8  ;;  %v199_v13 = vld [vmem:[%s1516_s6] sm:$0xff]  ;;  %v1538_v14 = vsub.f32 %v208_v0, %v1523_v3  ;;  %231 = vmatpush.msra.mxu0 %v1523_v3  ;;  %v1542_v15 = vsub.f32 %v207_v1, %v1525_v4  ;;  %332 = vmatpush.msra.mxu3 %v1523_v3  ;;  %v1148_v55 = vld [vmem:[%s1516_s6 + $0x38] sm:$0xff]  ;;  %v1146_v1 = vld [vmem:[%s1516_s6 + $0x28] sm:$0xff]  ;;  %s1155_s24 = sshll.u32 %s1372_s12, 4 }
  0x2a   : > { %v1545_v16 = vand.u32 4294901760, %v214_v11  ;;  %v407_v17 = vsel %vm209_vm0, %v199_v13, 0  ;;  %v1550_v19 = vsub.f32 %v202_v6, %v1531_v10  ;;  %v410_v38 = vsel %vm209_vm0, %v200_v28, 0  ;;  %v1145_v58 = vld [vmem:[%s1516_s6 + $0x20] sm:$0xff]  ;;  %s1028_s7 = scalar_lea.hbm %s1688_s2, %s1155_s24  ;;  %s198_s15 = scalar_lea.vmem [#allocation7], %s1142_s19 }
  0x2b   : > { %v235_v18 = vsub.f32 %v211_v5, %v1529_v9  ;;  %v1553_v20 = vsub.f32 %v201_v8, %v1534_v12  ;;  %v1555_v21 = vand.u32 4294901760, %v407_v17  ;;  %302 = vmatpush.msra.mxu2 %v1538_v14  ;;  %233 = vmatpush.msra.mxu0 %v1525_v4  ;;  %v1560_v22 = vand.u32 4294901760, %v1538_v14  ;;  %s1029_s16 = sshll.u32 %s198_s15, 4  ;;  %s1031_s21 = sshll.u32 %s1028_s7, 4  ;;  %s1030_s16 = int_to_ptr.vmem [resolvable:$true] %s1029_s16  ;;  %s1032_s21 = int_to_ptr.hbm [resolvable:$true] %s1031_s21 }
  0x2c   : > { %v1563_v23 = vand.u32 4294901760, %v1542_v15  ;;  %v243_v24 = vsub.f32 %v214_v11, %v1545_v16  ;;  %334 = vmatpush.msra.mxu3 %v1525_v4  ;;  %v1568_v26 = vand.u32 4294901760, %v1550_v19  ;;  %v438_v44 = vand.u32 4294901760, %v410_v38  ;;  %s1015_s12 = scalar_lea.sflag [#allocation4], %s1512_s30  ;;  %s1308_s22 = sshra.s32 %s1032_s21, 4  ;;  %s1309_s22 = int_to_ptr.hbm [resolvable:$true] %s1308_s22 }
  0x2d   : > { %v236_v25 = vand.u32 4294901760, %v235_v18  ;;  %v1571_v27 = vand.u32 4294901760, %v1553_v20  ;;  %305 = vmatpush.msra.mxu2 %v1542_v15  ;;  %v268_v29 = vsub.f32 %v1538_v14, %v1560_v22  ;;  %365 = vmatpush.msrb.mxu0 %v1560_v22  ;;  %v1581_v31 = vsub.f32 %v407_v17, %v1555_v21  ;;  %s1310_s23 = scalar_lea.hbm %s1309_s22, 16  ;;  %s1314_s26 = scalar_lea.hbm %s1688_s2, 32 }
  0x2e   : > { %v274_v30 = vsub.f32 %v1542_v15, %v1563_v23  ;;  %308 = vmatmul.f32.vlgmr.msra.gmra.mxu2 %v235_v18  ;;  %v464_v33 = vsub.f32 %v1550_v19, %v1568_v26  ;;  %v244_v34 = vand.u32 4294901760, %v243_v24  ;;  %v439_v47 = vsub.f32 %v410_v38, %v438_v44  ;;  %p1311_p1 = scmp.ne.s32.totalorder %s1309_s22, %s1310_s23  ;;  %p1315_p10 = scmp.lt.s32.totalorder %s1309_s22, %s1688_s2 }
  0x2f   : > { %v237_v32 = vsub.f32 %v235_v18, %v236_v25  ;;  %338 = vmatmul.f32.vlgmr.msra.gmra.mxu3 %v236_v25  ;;  %v470_v35 = vsub.f32 %v1553_v20, %v1571_v27  ;;  %427 = vmatpush.msrb.mxu2 %v1531_v10  ;;  %v269_v36 = vand.u32 4294901760, %v268_v29  ;;  %v432_v43 = vand.u32 4294901760, %v1581_v31  ;;  %p1316_p12 = scmp.lt.s32.totalorder %s1314_s26, %s1310_s23 }
  0x30   : > { %v275_v37 = vand.u32 4294901760, %v274_v30  ;;  %369 = vmatpush.msrb.mxu0 %v1563_v23  ;;  %v465_v40 = vand.u32 4294901760, %v464_v33  ;;  %v245_v42 = vsub.f32 %v243_v24, %v244_v34  ;;  %v440_v49 = vand.u32 4294901760, %v439_v47  ;;  %p1312_p4 = pnand %p1311_p1, %p1485_p5 }
  0x31   : > { %v238_v39 = vand.u32 4294901760, %v237_v32  ;;  %v471_v41 = vand.u32 4294901760, %v470_v35  ;;  %270 = vmatpush.msra.mxu1 %v269_v36  ;;  %429 = vmatpush.msrb.mxu2 %v1534_v12  ;;  %v433_v46 = vsub.f32 %v1581_v31, %v432_v43  ;;  %v609_v53 = vsel %vm209_vm0, %v1147_v52, 0  ;;  %p1317_p13 = por %p1316_p12, %p1315_p10 }
  0x32   : > { %466 = vmatpush.msrb.mxu3 %v465_v40  ;;  %v246_v45 = vand.u32 4294901760, %v245_v42  ;;  %v441_v50 = vsub.f32 %v439_v47, %v440_v49  ;;  %v632_v54 = vand.u32 4294901760, %v609_v53  ;;  %v612_v57 = vsel %vm209_vm0, %v1148_v55, 0  ;;  %p1313_p8 = pneg %p1312_p4 }
  0x33   : > { %239 = vmatmul.f32.vlgmr.msra.gmra.mxu0 %v238_v39  ;;  %276 = vmatpush.msra.mxu1 %v275_v37  ;;  %v434_v48 = vand.u32 4294901760, %v433_v46  ;;  %v640_v60 = vand.u32 4294901760, %v612_v57  ;;  %v805_v61 = vsel %vm209_vm0, %v1145_v58, 0  ;;  %v808_v6 = vsel %vm209_vm0, %v1146_v1, 0 }
  0x34   : > { %561 = vmatpush.msra.mxu2 %v1568_v26  ;;  %278 = vmatmul.f32.vlgmr.msra.gmra.mxu1 %v1529_v9  ;;  %v442_v51 = vand.u32 4294901760, %v441_v50  ;;  %v633_v56 = vsub.f32 %v609_v53, %v632_v54  ;;  %v828_v0 = vand.u32 4294901760, %v805_v61  ;;  %v836_v8 = vand.u32 4294901760, %v808_v6  ;;  %p1318_p0 = pnand %p1317_p13, %p1313_p8 }
  0x35   : > { %472 = vmatpush.msrb.mxu3 %v471_v41  ;;  %394 = vmatpush.msrb.mxu1 %v1523_v3  ;;  %v641_v63 = vsub.f32 %v612_v57, %v640_v60  ;;  %vm1011_vm2 = vcmask 523264  }
  0x36   : > { %498 = vmatpush.msra.mxu0 %v1550_v19  ;;  %313 = vmatmul.f32.gmra.mxu2 %v243_v24  ;;  %v634_v59 = vand.u32 4294901760, %v633_v56  ;;  %v829_v5 = vsub.f32 %v805_v61, %v828_v0  ;;  %v837_v13 = vsub.f32 %v808_v6, %v836_v8 }
  0x37   : > { %344 = vmatmul.f32.gmra.mxu3 %v244_v34  ;;  %396 = vmatpush.msrb.mxu1 %v1525_v4 }
  0x38   : > { %590 = vmatpush.msra.mxu3 %v1531_v10  ;;  %565 = vmatpush.msra.mxu2 %v1571_v27  ;;  %v635_v62 = vsub.f32 %v633_v56, %v634_v59  ;;  %v830_v7 = vand.u32 4294901760, %v829_v5 }
  0x39   : > { %528 = vmatpush.msra.mxu1 %v1531_v10  ;;  %501 = vmatpush.msra.mxu0 %v1553_v20 }
  0x3a   : > { %592 = vmatpush.msra.mxu3 %v1534_v12  ;;  %v636_v2 = vand.u32 4294901760, %v635_v62  ;;  %v831_v11 = vsub.f32 %v829_v5, %v830_v7 }
  0x3b   : > { %247 = vmatmul.f32.gmra.mxu0 %v246_v45  ;;  %530 = vmatpush.msra.mxu1 %v1534_v12 }
  0x3c   : > { %282 = vmatmul.f32.gmra.mxu1 %v1545_v16 }
  0x3e   : > { %435 = vmatmul.f32.vlgmr.msrb.gmra.mxu2 %v434_v48 }
  0x3f   : > { %474 = vmatmul.f32.vlgmr.msrb.gmra.mxu3 %v1555_v21  ;;  %700 = vmatpush.msrb.mxu2 %v1538_v14  ;;  %v832_v14 = vand.u32 4294901760, %v831_v11 }
  0x40   : > { %730 = vmatpush.msrb.mxu3 %v1523_v3 }
  0x41   : > { %703 = vmatpush.msrb.mxu2 %v1542_v15  ;;  %v838_v15 = vand.u32 4294901760, %v837_v13 }
  0x42   : > { %732 = vmatpush.msrb.mxu3 %v1525_v4 }
  0x43   : > { %371 = vmatmul.f32.vlgmr.msrb.gmra.mxu0 %v1529_v9 }
  0x44   : > { %629 = vmatpush.msrb.mxu0 %v1523_v3  ;;  %398 = vmatmul.f32.vlgmr.msrb.gmra.mxu1 %v1529_v9 }
  0x45   : > { %668 = vmatpush.msrb.mxu1 %v269_v36 }
  0x46   : > { %631 = vmatpush.msrb.mxu0 %v1525_v4  ;;  %443 = vmatmul.f32.gmra.mxu2 %v442_v51 }
  0x47   : > { %478 = vmatmul.f32.gmra.mxu3 %v438_v44  ;;  %674 = vmatpush.msrb.mxu1 %v275_v37 }
  0x4b   : > { %375 = vmatmul.f32.gmra.mxu0 %v1545_v16 }
  0x4c   : > { %402 = vmatmul.f32.gmra.mxu1 %v1545_v16  ;;  %v839_v16 = vsub.f32 %v837_v13, %v838_v15 }
  0x4e   : > { %567 = vmatmul.f32.vlgmr.msra.gmra.mxu2 %v1555_v21  ;;  %v840_v17 = vand.u32 4294901760, %v839_v16 }
  0x4f   : > { %594 = vmatmul.f32.vlgmr.msra.gmra.mxu3 %v1555_v21  ;;  %825 = vmatpush.msra.mxu2 %v1531_v10 }
  0x50   : > { %864 = vmatpush.msra.mxu3 %v465_v40 }
  0x51   : > { %827 = vmatpush.msra.mxu2 %v1534_v12 }
  0x52   : > { %870 = vmatpush.msra.mxu3 %v471_v41 }
  0x53   : > { %504 = vmatmul.f32.vlgmr.msra.gmra.mxu0 %v1581_v31 }
  0x54   : > { %763 = vmatpush.msra.mxu0 %v1560_v22  ;;  %534 = vmatmul.f32.vlgmr.msra.gmra.mxu1 %v432_v43 }
  0x55   : > { %792 = vmatpush.msra.mxu1 %v1523_v3  ;;  %v642_v3 = vand.u32 4294901760, %v641_v63 }
  0x56   : > { %767 = vmatpush.msra.mxu0 %v1563_v23  ;;  %571 = vmatmul.f32.gmra.mxu2 %v438_v44 }
  0x57   : > { %598 = vmatmul.f32.gmra.mxu3 %v438_v44  ;;  %794 = vmatpush.msra.mxu1 %v1525_v4  ;;  %v643_v4 = vsub.f32 %v641_v63, %v642_v3 }
  0x59   : > { %v644_v9 = vand.u32 4294901760, %v643_v4 }
  0x5b   : > { %509 = vmatmul.f32.gmra.mxu0 %v439_v47 }
  0x5c   : > { %540 = vmatmul.f32.gmra.mxu1 %v440_v49 }
  0x5e   : > { %706 = vmatmul.f32.vlgmr.msrb.gmra.mxu2 %v633_v56 }
  0x5f   : > { %736 = vmatmul.f32.vlgmr.msrb.gmra.mxu3 %v634_v59  ;;  %959 = vmatpush.msrb.mxu2 %v1568_v26 }
  0x60   : > { %988 = vmatpush.msrb.mxu3 %v1531_v10 }
  0x61   : > { %963 = vmatpush.msrb.mxu2 %v1571_v27 }
  0x62   : > { %990 = vmatpush.msrb.mxu3 %v1534_v12 }
  0x63   : > { %637 = vmatmul.f32.vlgmr.msrb.gmra.mxu0 %v636_v2 }
  0x64   : > { %896 = vmatpush.msrb.mxu0 %v1550_v19  ;;  %676 = vmatmul.f32.vlgmr.msrb.gmra.mxu1 %v632_v54 }
  0x65   : > { %926 = vmatpush.msrb.mxu1 %v1531_v10 }
  0x66   : > { %899 = vmatpush.msrb.mxu0 %v1553_v20  ;;  %711 = vmatmul.f32.gmra.mxu2 %v641_v63 }
  0x67   : > { %742 = vmatmul.f32.gmra.mxu3 %v642_v3  ;;  %928 = vmatpush.msrb.mxu1 %v1534_v12 }
  0x6b   : > { %645 = vmatmul.f32.gmra.mxu0 %v644_v9 }
  0x6c   : > { %680 = vmatmul.f32.gmra.mxu1 %v640_v60 }
  0x6e   : > { %833 = vmatmul.f32.vlgmr.msra.gmra.mxu2 %v832_v14 }
  0x6f   : > { %872 = vmatmul.f32.vlgmr.msra.gmra.mxu3 %v828_v0 }
  0x73   : > { %769 = vmatmul.f32.vlgmr.msra.gmra.mxu0 %v632_v54 }
  0x74   : > { %796 = vmatmul.f32.vlgmr.msra.gmra.mxu1 %v632_v54 }
  0x76   : > { %841 = vmatmul.f32.gmra.mxu2 %v840_v17 }
  0x77   : > { %876 = vmatmul.f32.gmra.mxu3 %v836_v8 }
  0x7b   : > { %773 = vmatmul.f32.gmra.mxu0 %v640_v60 }
  0x7c   : > { %800 = vmatmul.f32.gmra.mxu1 %v640_v60 }
  0x7e   : > { %965 = vmatmul.f32.vlgmr.msrb.gmra.mxu2 %v828_v0 }
  0x7f   : > { %992 = vmatmul.f32.vlgmr.msrb.gmra.mxu3 %v828_v0 }
  0x83   : > { %902 = vmatmul.f32.vlgmr.msrb.gmra.mxu0 %v829_v5 }
  0x84   : > { %932 = vmatmul.f32.vlgmr.msrb.gmra.mxu1 %v830_v7 }
  0x86   : > { %969 = vmatmul.f32.gmra.mxu2 %v836_v8 }
  0x87   : > { %996 = vmatmul.f32.gmra.mxu3 %v836_v8 }
  0x8b   : > { %907 = vmatmul.f32.gmra.mxu0 %v837_v13 }
  0x8c   : > { %938 = vmatmul.f32.gmra.mxu1 %v838_v15 }
  0xb0   : > { %v240_v10 = vpop.f32.mrf.mxu0 }
  0xb1   : > { %v279_v12 = vpop.f32.mrf.mxu1  ;;  %v309_v18 = vpop.f32.mrf.mxu2 }
  0xb2   : > { %v280_v19 = vadd.f32 %v279_v12, %v240_v10  ;;  %v339_v20 = vpop.f32.mrf.mxu3 }
  0xb4   : > { %v310_v21 = vadd.f32 %v309_v18, %v280_v19 }
  0xb6   : > { %v340_v22 = vadd.f32 %v339_v20, %v310_v21 }
  0xb8   : > { %v248_v23 = vpop.f32.mrf.mxu0 }
  0xb9   : > { %v283_v24 = vpop.f32.mrf.mxu1  ;;  %v314_v25 = vpop.f32.mrf.mxu2 }
  0xba   : > { %v284_v26 = vadd.f32 %v283_v24, %v248_v23  ;;  %v345_v27 = vpop.f32.mrf.mxu3 }
  0xbc   : > { %v315_v28 = vadd.f32 %v314_v25, %v284_v26 }
  0xbe   : > { %v346_v29 = vadd.f32 %v345_v27, %v315_v28 }
  0xc0   : > { %v372_v30 = vpop.f32.mrf.mxu0 }
  0xc1   : > { %v373_v31 = vadd.f32 %v372_v30, %v340_v22  ;;  %v399_v32 = vpop.f32.mrf.mxu1  ;;  %v436_v33 = vpop.f32.mrf.mxu2 }
  0xc2   : > { %v475_v35 = vpop.f32.mrf.mxu3 }
  0xc3   : > { %v400_v34 = vadd.f32 %v399_v32, %v373_v31 }
  0xc5   : > { %v437_v36 = vadd.f32 %v436_v33, %v400_v34 }
  0xc7   : > { %v476_v37 = vadd.f32 %v475_v35, %v437_v36 }
  0xc8   : > { %v376_v38 = vpop.f32.mrf.mxu0 }
  0xc9   : > { %v377_v39 = vadd.f32 %v376_v38, %v346_v29  ;;  %v403_v40 = vpop.f32.mrf.mxu1  ;;  %v444_v41 = vpop.f32.mrf.mxu2 }
  0xca   : > { %v479_v43 = vpop.f32.mrf.mxu3 }
  0xcb   : > { %v404_v42 = vadd.f32 %v403_v40, %v377_v39 }
  0xcd   : > { %v445_v44 = vadd.f32 %v444_v41, %v404_v42 }
  0xcf   : > { %v480_v45 = vadd.f32 %v479_v43, %v445_v44 }
  0xd0   : > { %v505_v46 = vpop.f32.mrf.mxu0 }
  0xd1   : > { %v506_v47 = vadd.f32 %v505_v46, %v476_v37  ;;  %v535_v48 = vpop.f32.mrf.mxu1  ;;  %v568_v49 = vpop.f32.mrf.mxu2 }
  0xd2   : > { %v595_v51 = vpop.f32.mrf.mxu3 }
  0xd3   : > { %v536_v50 = vadd.f32 %v535_v48, %v506_v47 }
  0xd5   : > { %v569_v52 = vadd.f32 %v568_v49, %v536_v50 }
  0xd7   : > { %v1641_v53 = vadd.f32 %v595_v51, %v569_v52 }
  0xd8   : > { %v510_v54 = vpop.f32.mrf.mxu0 }
  0xd9   : > { %v511_v55 = vadd.f32 %v510_v54, %v480_v45  ;;  %v541_v56 = vpop.f32.mrf.mxu1  ;;  %v572_v57 = vpop.f32.mrf.mxu2 }
  0xda   : > { %v599_v59 = vpop.f32.mrf.mxu3 }
  0xdb   : > { %v542_v58 = vadd.f32 %v541_v56, %v511_v55 }
  0xdd   : > { %v573_v60 = vadd.f32 %v572_v57, %v542_v58 }
  0xdf   : > { %v1643_v61 = vadd.f32 %v599_v59, %v573_v60 }
  0xe0   : > { %v638_v62 = vpop.f32.mrf.mxu0 }
  0xe1   : > { %v677_v63 = vpop.f32.mrf.mxu1  ;;  %v707_v0 = vpop.f32.mrf.mxu2 }
  0xe2   : > { %v737_v1 = vpop.f32.mrf.mxu3  ;;  %v678_v3 = vadd.f32 %v677_v63, %v638_v62 }
  0xe4   : > { %v708_v7 = vadd.f32 %v707_v0, %v678_v3 }
  0xe6   : > { %v738_v9 = vadd.f32 %v737_v1, %v708_v7 }
  0xe8   : > { %v646_v2 = vpop.f32.mrf.mxu0 }
  0xe9   : > { %v681_v5 = vpop.f32.mrf.mxu1  ;;  %v712_v6 = vpop.f32.mrf.mxu2 }
  0xea   : > { %v743_v4 = vpop.f32.mrf.mxu3  ;;  %v682_v11 = vadd.f32 %v681_v5, %v646_v2 }
  0xec   : > { %v713_v17 = vadd.f32 %v712_v6, %v682_v11 }
  0xee   : > { %v744_v18 = vadd.f32 %v743_v4, %v713_v17 }
  0xf0   : > { %v770_v8 = vpop.f32.mrf.mxu0 }
  0xf1   : > { %v797_v13 = vpop.f32.mrf.mxu1  ;;  %v834_v14 = vpop.f32.mrf.mxu2  ;;  %v771_v15 = vadd.f32 %v770_v8, %v738_v9 }
  0xf2   : > { %v873_v16 = vpop.f32.mrf.mxu3 }
  0xf3   : > { %v798_v10 = vadd.f32 %v797_v13, %v771_v15 }
  0xf5   : > { %v835_v21 = vadd.f32 %v834_v14, %v798_v10 }
  0xf7   : > { %v874_v24 = vadd.f32 %v873_v16, %v835_v21 }
  0xf8   : > { %v774_v12 = vpop.f32.mrf.mxu0 }
  0xf9   : > { %v801_v19 = vpop.f32.mrf.mxu1  ;;  %v842_v20 = vpop.f32.mrf.mxu2  ;;  %v775_v22 = vadd.f32 %v774_v12, %v744_v18 }
  0xfa   : > { %v877_v23 = vpop.f32.mrf.mxu3 }
  0xfb   : > { %v802_v25 = vadd.f32 %v801_v19, %v775_v22 }
  0xfd   : > { %v843_v30 = vadd.f32 %v842_v20, %v802_v25 }
  0xff   : > { %v878_v34 = vadd.f32 %v877_v23, %v843_v30 }
 0x100   : > { %v903_v26 = vpop.f32.mrf.mxu0 }
 0x101   : > { %v904_v27 = vadd.f32 %v903_v26, %v874_v24  ;;  %v933_v28 = vpop.f32.mrf.mxu1  ;;  %v966_v29 = vpop.f32.mrf.mxu2 }
 0x102   : > { %v993_v32 = vpop.f32.mrf.mxu3 }
 0x103   : > { %v934_v31 = vadd.f32 %v933_v28, %v904_v27 }
 0x105   : > { %v967_v33 = vadd.f32 %v966_v29, %v934_v31 }
 0x107   : > { %v994_v35 = vadd.f32 %v993_v32, %v967_v33 }
 0x108   : > { %v908_v36 = vpop.f32.mrf.mxu0 }
 0x109   : > { %v909_v37 = vadd.f32 %v908_v36, %v878_v34  ;;  %1002 = vrot.lane.b32.xlu0 %v994_v35, %s1385_s17  ;;  %v939_v38 = vpop.f32.mrf.mxu1  ;;  %v970_v39 = vpop.f32.mrf.mxu2 }
 0x10a   : > { %v997_v41 = vpop.f32.mrf.mxu3 }
 0x10b   : > { %v940_v40 = vadd.f32 %v939_v38, %v909_v37 }
 0x10d   : > { %v971_v42 = vadd.f32 %v970_v39, %v940_v40 }
 0x10f   : > { %v998_v43 = vadd.f32 %v997_v41, %v971_v42 }
 0x111   : > { %1004 = vrot.lane.b32.xlu0 %v998_v43, %s1385_s17 }
 0x17b   : > { %v1003_v44 = vpop.permute.xlu0 %1002 }
 0x17c   : > { %v1009_v45 = vsel %vm1008_vm1, %v1641_v53, %v1003_v44 }
 0x17d   : > { %1012 = vst.msk [vmem:[%s198_s15] sm:$0xff] %vm1011_vm2, %v1009_v45 }
 0x183   : > { %v1005_v46 = vpop.permute.xlu0 %1004 }
 0x184   : > { %v1010_v47 = vsel %vm1008_vm1, %v1643_v61, %v1005_v46 }
 0x185   : > { %1013 = vst.msk [vmem:[%s198_s15 + $0x8] sm:$0xff] %vm1011_vm2, %v1010_v47 }
 0x186   : > { %1321 = shalt.err (!%p1318_p0)
}
 0x187   : > { %s1386_s30 = smov 128   ;;  %s1387_s6 = smov 8  }
 0x188   : > { %1162 = dma.vmem_to_hbm [thread:$0]  (%p1485_p5), %s1030_s16, 256, %s1032_s21, %s1015_s12, %s1386_s30, %s1386_s30, %s1387_s6  }
 0x189 PF: > { %s1046_s17 = sand.u32 1, %s1360_s9   ;;  %p1173_p3 = pnand %p1135_p11, %p1452_p6 }
 0x18a   : > { %s1047_s19 = scalar_lea.sflag [#allocation4], %s1046_s17 }
 0x18b   : > { %p1174_p7 = pneg %p1173_p3 }
 0x18d   : > { %1355 = dma.done.wait (%p1174_p7), %s1047_s19, 256  }
 0x18e   : > { %1357 = vsyncadd (%p1174_p7), %s1047_s19, 4294967040  ;;  %s19_s14 = sadd.s32 1, %s1380_s14   ;;  %s1696_s9 = smov %s1364_s10 }
 0x18f   : > { %p16_p9 = scmp.ge.s32.totalorder %s19_s14, 4   ;;  %s1697_s10 = smov %s1368_s11 }
 0x190   : > { %s1698_s11 = smov %s1494_s8  ;;  %s1699_s12 = smov %s1376_s13 }
 0x191   : > { %s1700_s13 = smov %s1702_s29  ;;  %18 = sbr.rel (!%p16_p9) target bundleno = 7 (0x7), region = 82 }
 0x196   :  { %1053 = vsyncpa [#allocation3], 1 }
 0x197   :  { %1055 = vsyncpa [#allocation3 + $0x1], 1 }
 0x198   :  { %1056 = vsyncpa [#allocation6], 1 }
 0x199   :  { %1058 = vsyncpa [#allocation6 + $0x1], 1 }
 0x19a   :  { %1059 = vsyncpa [#allocation4], 1 }
 0x19b   :  { %1061 = vsyncpa [#allocation4 + $0x1], 1 }

</bundles_post_ra>
